<compile_context>
chip_gen: v7x
topology: tpu7x:2x2x1
jax: 0.10.0
libtpu: 0.0.40
codegen_flags: <defaults>
</compile_context>

<pallas_src>
import jax
import jax.numpy as jnp
import numpy as np
from jax import lax
from jax.experimental import pallas as pl
from jax.experimental.pallas import tpu as pltpu


def convnn_kernel(xt_ref, nf_ref, nl_ref,
                  w1_ref, b1_ref, w2_ref, b2_ref, w3_ref, b3_ref,
                  wf1_ref, bf1_ref, wf2_ref, bf2_ref,
                  o_ref):
    Bt, L, C3 = xt_ref.shape
    H = w1_ref.shape[-1]
    Lh = L // 2
    M = Bt * L

    # Boundary masks (1.0 where the shifted tap is valid, 0.0 at the 'same'
    # padding border).  Computed once in the wrapper and reused by both convs.
    nf = nf_ref[...]            # (M, 1): 0.0 on rows with l == 0
    nl = nl_ref[...]            # (M, 1): 0.0 on rows with l == L - 1

    def matmul_bias(a, w_ref, b_ref):
        # bf16 operands, f32 accumulation on the MXU; bias added in f32.
        y = jnp.dot(a.astype(jnp.bfloat16), w_ref[...],
                    preferred_element_type=jnp.float32)
        return y + b_ref[...]

    # ---- conv1 (+ folded BatchNorm) + ReLU: taps prebuilt in the wrapper ----
    h = jnp.maximum(matmul_bias(xt_ref[...].reshape(M, C3), w1_ref, b1_ref), 0.0)

    # ---- conv2 / conv3 + ReLU: build shifted taps in-kernel --------------
    # Roll along the flattened (Bt*L) row axis; rows that would read across a
    # padding (or batch) boundary are zeroed by the masks, which reproduces the
    # Conv1d(kernel=3, padding=1) zero padding exactly.
    def conv_relu(h, w_ref, b_ref):
        hp = pltpu.roll(h, shift=1, axis=0) * nf        # h[l-1], 0 at l == 0
        hn = pltpu.roll(h, shift=M - 1, axis=0) * nl    # h[l+1], 0 at l == L-1
        taps = jnp.concatenate([hp, h, hn], axis=-1)    # (M, 3*H)
        return jnp.maximum(matmul_bias(taps, w_ref, b_ref), 0.0)

    h = conv_relu(h, w2_ref, b2_ref)
    h = conv_relu(h, w3_ref, b3_ref)                    # (M, H)

    # ---- MaxPool1d(2) + Flatten -> single lane-dense slab -----------------
    # wf1 was re-laid in the wrapper to (p, c, out) order, so concatenating the
    # pooled positions along the lane axis gives exactly the FC1 input layout.
    h3 = h.reshape(Bt, L, H)
    pooled = [jnp.maximum(h3[:, 2 * p, :], h3[:, 2 * p + 1, :]) for p in range(Lh)]
    flat = jnp.concatenate(pooled, axis=-1)             # (Bt, Lh*H)

    # ---- FC1 + ReLU, FC2 (output padded to 128 lanes) ---------------------
    z = jnp.maximum(matmul_bias(flat, wf1_ref, bf1_ref), 0.0)   # (Bt, H)
    o_ref[...] = matmul_bias(z, wf2_ref, bf2_ref)               # (Bt, Opad)


def convnn_forward(x_ncl, params):
    """x_ncl: (B, Cin, L) float32 in PyTorch Conv1d layout."""
    B, Cin, L = x_ncl.shape
    H = params["w_conv1"].shape[0]
    O = params["w_fc2"].shape[0]
    assert L % 2 == 0, "MaxPool1d(2) requires an even length (matches PyTorch default)"
    Lh = L // 2

    # ---- batch tiling: aim for Bt*L rows per MXU pass (256-ish) ------------
    Bt = max(1, min(B, -(-256 // L)))
    if -(-B // Bt) > 1:
        Bt = -(-Bt // 8) * 8          # keep multi-step output blocks sublane-aligned
    nB = -(-B // Bt)
    B_pad = nB * Bt
    M = Bt * L

    x = jnp.transpose(x_ncl, (0, 2, 1)).astype(jnp.float32)          # (B, L, Cin)
    if B_pad != B:
        x = jnp.pad(x, ((0, B_pad - B), (0, 0), (0, 0)))

    # Layer-1 taps precomputed outside the kernel ('same' zero padding).
    zrow = jnp.zeros((B_pad, 1, Cin), jnp.float32)
    x_prev = jnp.concatenate([zrow, x[:, :-1, :]], axis=1)
    x_next = jnp.concatenate([x[:, 1:, :], zrow], axis=1)
    x_taps = jnp.concatenate([x_prev, x, x_next], axis=-1)           # (B_pad, L, 3*Cin)

    def conv_w(w):
        # (Cout, Cin, K) -> (K*Cin, Cout), tap-major: matches [prev | cur | next].
        return jnp.transpose(w, (2, 1, 0)).reshape(3 * w.shape[1], w.shape[0])

    # Fold eval-mode BatchNorm into conv1.
    eps = 1e-5
    bn_scale = params["bn_gamma"] / jnp.sqrt(params["bn_var"] + eps)
    bn_shift = params["bn_beta"] - params["bn_mean"] * bn_scale
    w1_folded = params["w_conv1"] * bn_scale[:, None, None]
    b1_folded = params["b_conv1"] * bn_scale + bn_shift

    w1 = conv_w(w1_folded).astype(jnp.bfloat16)                      # (3*Cin, H)
    w2 = conv_w(params["w_conv2"]).astype(jnp.bfloat16)              # (3*H, H)
    w3 = conv_w(params["w_conv3"]).astype(jnp.bfloat16)
    b1 = b1_folded.reshape(1, H).astype(jnp.float32)
    b2 = params["b_conv2"].reshape(1, H).astype(jnp.float32)
    b3 = params["b_conv3"].reshape(1, H).astype(jnp.float32)

    # PyTorch Flatten of (B, H, Lh) indexes the FC1 input as c*Lh + p; re-lay
    # the FC1 weight to position-major (p*H + c) to match the kernel's pooled
    # lane-concatenation order.
    wf1 = jnp.transpose(params["w_fc1"].reshape(H, H, Lh), (2, 1, 0))
    wf1 = wf1.reshape(Lh * H, H).astype(jnp.bfloat16)                # (Lh*H, H)
    bf1 = params["b_fc1"].reshape(1, H).astype(jnp.float32)

    # Pad FC2 output to 128 lanes for a lane-dense store.
    Opad = 128 * (-(-O // 128))
    wf2 = jnp.zeros((H, Opad), jnp.float32).at[:, :O].set(params["w_fc2"].T)
    wf2 = wf2.astype(jnp.bfloat16)
    bf2 = jnp.zeros((1, Opad), jnp.float32).at[:, :O].set(params["b_fc2"].reshape(1, O))

    # Boundary masks for the in-kernel shifted taps (rows where l==0 / l==L-1).
    l_idx = jnp.tile(jnp.arange(L, dtype=jnp.int32), Bt)
    not_first = (l_idx != 0).astype(jnp.float32).reshape(M, 1)
    not_last = (l_idx != L - 1).astype(jnp.float32).reshape(M, 1)

    weights = (not_first, not_last, w1, b1, w2, b2, w3, b3, wf1, bf1, wf2, bf2)

    def full(a):
        return pl.BlockSpec(a.shape, lambda b, _n=a.ndim: (0,) * _n)

    in_specs = [pl.BlockSpec((Bt, L, 3 * Cin), lambda b: (b, 0, 0))]
    in_specs += [full(a) for a in weights]

    out = pl.pallas_call(
        convnn_kernel,
        out_shape=jax.ShapeDtypeStruct((B_pad, Opad), jnp.float32),
        grid=(nB,),
        in_specs=in_specs,
        out_specs=pl.BlockSpec((Bt, Opad), lambda b: (b, 0)),
        compiler_params=pltpu.CompilerParams(dimension_semantics=("parallel",)),
    )(x_taps, *weights)
    return out[:B, :O]


def ref_forward(x_ncl, params):
    """Pure-JAX reference mirroring the PyTorch module (eval-mode BN)."""
    eps = 1e-5

    def conv(x, w, b):
        y = lax.conv_general_dilated(x, w, window_strides=(1,), padding=((1, 1),),
                                     dimension_numbers=("NCH", "OIH", "NCH"))
        return y + b[None, :, None]

    h = conv(x_ncl, params["w_conv1"], params["b_conv1"])
    h = (h - params["bn_mean"][None, :, None]) / jnp.sqrt(params["bn_var"] + eps)[None, :, None]
    h = h * params["bn_gamma"][None, :, None] + params["bn_beta"][None, :, None]
    h = jnp.maximum(h, 0.0)
    h = jnp.maximum(conv(h, params["w_conv2"], params["b_conv2"]), 0.0)
    h = jnp.maximum(conv(h, params["w_conv3"], params["b_conv3"]), 0.0)
    B, C, L = h.shape
    h = jnp.max(h.reshape(B, C, L // 2, 2), axis=-1)          # MaxPool1d(2)
    flat = h.reshape(B, C * (L // 2))                          # Flatten (channel-major)
    z = jnp.maximum(flat @ params["w_fc1"].T + params["b_fc1"], 0.0)
    return z @ params["w_fc2"].T + params["b_fc2"]


if __name__ == "__main__":
    B, Cin, L, H, O = 2, 4, 16, 32, 10          # flatten_factor = L // 2 = 8
    FF = L // 2

    key = jax.random.PRNGKey(0)
    ks = jax.random.split(key, 11)
    params = {
        "w_conv1": jax.random.normal(ks[0], (H, Cin, 3), jnp.float32) * 0.1,
        "b_conv1": jax.random.normal(ks[1], (H,), jnp.float32) * 0.1,
        "bn_gamma": jnp.ones((H,), jnp.float32),
        "bn_beta": jnp.zeros((H,), jnp.float32),
        "bn_mean": jnp.zeros((H,), jnp.float32),
        "bn_var": jnp.ones((H,), jnp.float32),
        "w_conv2": jax.random.normal(ks[2], (H, H, 3), jnp.float32) * 0.1,
        "b_conv2": jax.random.normal(ks[3], (H,), jnp.float32) * 0.1,
        "w_conv3": jax.random.normal(ks[4], (H, H, 3), jnp.float32) * 0.1,
        "b_conv3": jax.random.normal(ks[5], (H,), jnp.float32) * 0.1,
        "w_fc1": jax.random.normal(ks[6], (H, H * FF), jnp.float32) * 0.1,
        "b_fc1": jax.random.normal(ks[7], (H,), jnp.float32) * 0.1,
        "w_fc2": jax.random.normal(ks[8], (O, H), jnp.float32) * 0.1,
        "b_fc2": jax.random.normal(ks[9], (O,), jnp.float32) * 0.1,
    }
    x = jax.random.normal(ks[10], (B, Cin, L), jnp.float32)    # PyTorch (N, C, L)

    out = jax.block_until_ready(convnn_forward(x, params))
    ref = ref_forward(x, params)
    np.testing.assert_allclose(np.asarray(out), np.asarray(ref), rtol=2e-2, atol=2e-2)
    print("KERNEL_OK")
</pallas_src>

<mosaic_0001>
module attributes {stable_mosaic.version = 11 : i64} {
  func.func @convnn_kernel(%arg0: i32, %arg1: memref<2x16x12xf32, #tpu.memory_space<vmem>>, %arg2: memref<32x1xf32, #tpu.memory_space<vmem>>, %arg3: memref<32x1xf32, #tpu.memory_space<vmem>>, %arg4: memref<12x32xbf16, #tpu.memory_space<vmem>>, %arg5: memref<1x32xf32, #tpu.memory_space<vmem>>, %arg6: memref<96x32xbf16, #tpu.memory_space<vmem>>, %arg7: memref<1x32xf32, #tpu.memory_space<vmem>>, %arg8: memref<96x32xbf16, #tpu.memory_space<vmem>>, %arg9: memref<1x32xf32, #tpu.memory_space<vmem>>, %arg10: memref<256x32xbf16, #tpu.memory_space<vmem>>, %arg11: memref<1x32xf32, #tpu.memory_space<vmem>>, %arg12: memref<32x128xbf16, #tpu.memory_space<vmem>>, %arg13: memref<1x128xf32, #tpu.memory_space<vmem>>, %arg14: memref<2x128xf32, #tpu.memory_space<vmem>>) attributes {dimension_semantics = [#tpu.dimension_semantics<parallel>], iteration_bounds = array<i64: 1>, scalar_prefetch = 0 : i64, scratch_operands = 0 : i64, tpu.core_type = #tpu.core_type<tc>, window_params = [{transform_indices = @transform_0, window_bounds = array<i64: 2, 16, 12>}, {pipeline_mode = #tpu.pipeline_mode<synchronous>, transform_indices = @transform_1, window_bounds = array<i64: 32, 1>}, {pipeline_mode = #tpu.pipeline_mode<synchronous>, transform_indices = @transform_2, window_bounds = array<i64: 32, 1>}, {pipeline_mode = #tpu.pipeline_mode<synchronous>, transform_indices = @transform_3, window_bounds = array<i64: 12, 32>}, {pipeline_mode = #tpu.pipeline_mode<synchronous>, transform_indices = @transform_4, window_bounds = array<i64: 1, 32>}, {pipeline_mode = #tpu.pipeline_mode<synchronous>, transform_indices = @transform_5, window_bounds = array<i64: 96, 32>}, {pipeline_mode = #tpu.pipeline_mode<synchronous>, transform_indices = @transform_6, window_bounds = array<i64: 1, 32>}, {pipeline_mode = #tpu.pipeline_mode<synchronous>, transform_indices = @transform_7, window_bounds = array<i64: 96, 32>}, {pipeline_mode = #tpu.pipeline_mode<synchronous>, transform_indices = @transform_8, window_bounds = array<i64: 1, 32>}, {pipeline_mode = #tpu.pipeline_mode<synchronous>, transform_indices = @transform_9, window_bounds = array<i64: 256, 32>}, {pipeline_mode = #tpu.pipeline_mode<synchronous>, transform_indices = @transform_10, window_bounds = array<i64: 1, 32>}, {pipeline_mode = #tpu.pipeline_mode<synchronous>, transform_indices = @transform_11, window_bounds = array<i64: 32, 128>}, {pipeline_mode = #tpu.pipeline_mode<synchronous>, transform_indices = @transform_12, window_bounds = array<i64: 1, 128>}, {transform_indices = @transform_13, window_bounds = array<i64: 2, 128>}]} {
    %c0 = arith.constant 0 : index
    %c0_0 = arith.constant 0 : index
    %0 = vector.load %arg2[%c0, %c0_0] : memref<32x1xf32, #tpu.memory_space<vmem>>, vector<32x1xf32>
    %c0_1 = arith.constant 0 : index
    %c0_2 = arith.constant 0 : index
    %1 = vector.load %arg3[%c0_1, %c0_2] : memref<32x1xf32, #tpu.memory_space<vmem>>, vector<32x1xf32>
    %c0_3 = arith.constant 0 : index
    %c0_4 = arith.constant 0 : index
    %c0_5 = arith.constant 0 : index
    %2 = vector.load %arg1[%c0_3, %c0_4, %c0_5] : memref<2x16x12xf32, #tpu.memory_space<vmem>>, vector<2x16x12xf32>
    %3 = vector.shape_cast %2 : vector<2x16x12xf32> to vector<32x12xf32>
    %4 = arith.truncf %3 : vector<32x12xf32> to vector<32x12xbf16>
    %c0_6 = arith.constant 0 : index
    %c0_7 = arith.constant 0 : index
    %5 = vector.load %arg4[%c0_6, %c0_7] : memref<12x32xbf16, #tpu.memory_space<vmem>>, vector<12x32xbf16>
    %cst = arith.constant dense<0.000000e+00> : vector<32x32xf32>
    %6 = tpu.matmul %4, %5, %cst {dimension_numbers = #tpu.dot_dimension_numbers<[1], [0], [0], [1], [0, 0, 1, 1], [], []>} : vector<32x12xbf16>, vector<12x32xbf16>, vector<32x32xf32> -> vector<32x32xf32>
    %c0_8 = arith.constant 0 : index
    %c0_9 = arith.constant 0 : index
    %7 = vector.load %arg5[%c0_8, %c0_9] : memref<1x32xf32, #tpu.memory_space<vmem>>, vector<1x32xf32>
    %8 = vector.broadcast %7 : vector<1x32xf32> to vector<32x32xf32>
    %9 = arith.addf %6, %8 : vector<32x32xf32>
    %cst_10 = arith.constant 0.000000e+00 : f32
    %10 = vector.broadcast %cst_10 : f32 to vector<32x32xf32>
    %11 = arith.maximumf %9, %10 : vector<32x32xf32>
    %c1_i32 = arith.constant 1 : i32
    %12 = tpu.dynamic_rotate %11 by %c1_i32 dim 0 : vector<32x32xf32>, i32 -> vector<32x32xf32>
    %13 = vector.broadcast %0 : vector<32x1xf32> to vector<32x32xf32>
    %14 = arith.mulf %12, %13 : vector<32x32xf32>
    %c31_i32 = arith.constant 31 : i32
    %15 = tpu.dynamic_rotate %11 by %c31_i32 dim 0 : vector<32x32xf32>, i32 -> vector<32x32xf32>
    %16 = vector.broadcast %1 : vector<32x1xf32> to vector<32x32xf32>
    %17 = arith.mulf %15, %16 : vector<32x32xf32>
    %18 = tpu.concatenate %14, %11, %17 in 1 : vector<32x32xf32>, vector<32x32xf32>, vector<32x32xf32> -> vector<32x96xf32>
    %19 = arith.truncf %18 : vector<32x96xf32> to vector<32x96xbf16>
    %c0_11 = arith.constant 0 : index
    %c0_12 = arith.constant 0 : index
    %20 = vector.load %arg6[%c0_11, %c0_12] : memref<96x32xbf16, #tpu.memory_space<vmem>>, vector<96x32xbf16>
    %cst_13 = arith.constant dense<0.000000e+00> : vector<32x32xf32>
    %21 = tpu.matmul %19, %20, %cst_13 {dimension_numbers = #tpu.dot_dimension_numbers<[1], [0], [0], [1], [0, 0, 1, 1], [], []>} : vector<32x96xbf16>, vector<96x32xbf16>, vector<32x32xf32> -> vector<32x32xf32>
    %c0_14 = arith.constant 0 : index
    %c0_15 = arith.constant 0 : index
    %22 = vector.load %arg7[%c0_14, %c0_15] : memref<1x32xf32, #tpu.memory_space<vmem>>, vector<1x32xf32>
    %23 = vector.broadcast %22 : vector<1x32xf32> to vector<32x32xf32>
    %24 = arith.addf %21, %23 : vector<32x32xf32>
    %cst_16 = arith.constant 0.000000e+00 : f32
    %25 = vector.broadcast %cst_16 : f32 to vector<32x32xf32>
    %26 = arith.maximumf %24, %25 : vector<32x32xf32>
    %c1_i32_17 = arith.constant 1 : i32
    %27 = tpu.dynamic_rotate %26 by %c1_i32_17 dim 0 : vector<32x32xf32>, i32 -> vector<32x32xf32>
    %28 = vector.broadcast %0 : vector<32x1xf32> to vector<32x32xf32>
    %29 = arith.mulf %27, %28 : vector<32x32xf32>
    %c31_i32_18 = arith.constant 31 : i32
    %30 = tpu.dynamic_rotate %26 by %c31_i32_18 dim 0 : vector<32x32xf32>, i32 -> vector<32x32xf32>
    %31 = vector.broadcast %1 : vector<32x1xf32> to vector<32x32xf32>
    %32 = arith.mulf %30, %31 : vector<32x32xf32>
    %33 = tpu.concatenate %29, %26, %32 in 1 : vector<32x32xf32>, vector<32x32xf32>, vector<32x32xf32> -> vector<32x96xf32>
    %34 = arith.truncf %33 : vector<32x96xf32> to vector<32x96xbf16>
    %c0_19 = arith.constant 0 : index
    %c0_20 = arith.constant 0 : index
    %35 = vector.load %arg8[%c0_19, %c0_20] : memref<96x32xbf16, #tpu.memory_space<vmem>>, vector<96x32xbf16>
    %cst_21 = arith.constant dense<0.000000e+00> : vector<32x32xf32>
    %36 = tpu.matmul %34, %35, %cst_21 {dimension_numbers = #tpu.dot_dimension_numbers<[1], [0], [0], [1], [0, 0, 1, 1], [], []>} : vector<32x96xbf16>, vector<96x32xbf16>, vector<32x32xf32> -> vector<32x32xf32>
    %c0_22 = arith.constant 0 : index
    %c0_23 = arith.constant 0 : index
    %37 = vector.load %arg9[%c0_22, %c0_23] : memref<1x32xf32, #tpu.memory_space<vmem>>, vector<1x32xf32>
    %38 = vector.broadcast %37 : vector<1x32xf32> to vector<32x32xf32>
    %39 = arith.addf %36, %38 : vector<32x32xf32>
    %cst_24 = arith.constant 0.000000e+00 : f32
    %40 = vector.broadcast %cst_24 : f32 to vector<32x32xf32>
    %41 = arith.maximumf %39, %40 : vector<32x32xf32>
    %42 = vector.shape_cast %41 : vector<32x32xf32> to vector<2x16x32xf32>
    %43 = vector.extract_strided_slice %42 {offsets = [0, 0, 0], sizes = [2, 1, 32], strides = [1, 1, 1]} : vector<2x16x32xf32> to vector<2x1x32xf32>
    %44 = vector.shape_cast %43 : vector<2x1x32xf32> to vector<2x32xf32>
    %45 = vector.extract_strided_slice %42 {offsets = [0, 1, 0], sizes = [2, 1, 32], strides = [1, 1, 1]} : vector<2x16x32xf32> to vector<2x1x32xf32>
    %46 = vector.shape_cast %45 : vector<2x1x32xf32> to vector<2x32xf32>
    %47 = arith.maximumf %44, %46 : vector<2x32xf32>
    %48 = vector.extract_strided_slice %42 {offsets = [0, 2, 0], sizes = [2, 1, 32], strides = [1, 1, 1]} : vector<2x16x32xf32> to vector<2x1x32xf32>
    %49 = vector.shape_cast %48 : vector<2x1x32xf32> to vector<2x32xf32>
    %50 = vector.extract_strided_slice %42 {offsets = [0, 3, 0], sizes = [2, 1, 32], strides = [1, 1, 1]} : vector<2x16x32xf32> to vector<2x1x32xf32>
    %51 = vector.shape_cast %50 : vector<2x1x32xf32> to vector<2x32xf32>
    %52 = arith.maximumf %49, %51 : vector<2x32xf32>
    %53 = vector.extract_strided_slice %42 {offsets = [0, 4, 0], sizes = [2, 1, 32], strides = [1, 1, 1]} : vector<2x16x32xf32> to vector<2x1x32xf32>
    %54 = vector.shape_cast %53 : vector<2x1x32xf32> to vector<2x32xf32>
    %55 = vector.extract_strided_slice %42 {offsets = [0, 5, 0], sizes = [2, 1, 32], strides = [1, 1, 1]} : vector<2x16x32xf32> to vector<2x1x32xf32>
    %56 = vector.shape_cast %55 : vector<2x1x32xf32> to vector<2x32xf32>
    %57 = arith.maximumf %54, %56 : vector<2x32xf32>
    %58 = vector.extract_strided_slice %42 {offsets = [0, 6, 0], sizes = [2, 1, 32], strides = [1, 1, 1]} : vector<2x16x32xf32> to vector<2x1x32xf32>
    %59 = vector.shape_cast %58 : vector<2x1x32xf32> to vector<2x32xf32>
    %60 = vector.extract_strided_slice %42 {offsets = [0, 7, 0], sizes = [2, 1, 32], strides = [1, 1, 1]} : vector<2x16x32xf32> to vector<2x1x32xf32>
    %61 = vector.shape_cast %60 : vector<2x1x32xf32> to vector<2x32xf32>
    %62 = arith.maximumf %59, %61 : vector<2x32xf32>
    %63 = vector.extract_strided_slice %42 {offsets = [0, 8, 0], sizes = [2, 1, 32], strides = [1, 1, 1]} : vector<2x16x32xf32> to vector<2x1x32xf32>
    %64 = vector.shape_cast %63 : vector<2x1x32xf32> to vector<2x32xf32>
    %65 = vector.extract_strided_slice %42 {offsets = [0, 9, 0], sizes = [2, 1, 32], strides = [1, 1, 1]} : vector<2x16x32xf32> to vector<2x1x32xf32>
    %66 = vector.shape_cast %65 : vector<2x1x32xf32> to vector<2x32xf32>
    %67 = arith.maximumf %64, %66 : vector<2x32xf32>
    %68 = vector.extract_strided_slice %42 {offsets = [0, 10, 0], sizes = [2, 1, 32], strides = [1, 1, 1]} : vector<2x16x32xf32> to vector<2x1x32xf32>
    %69 = vector.shape_cast %68 : vector<2x1x32xf32> to vector<2x32xf32>
    %70 = vector.extract_strided_slice %42 {offsets = [0, 11, 0], sizes = [2, 1, 32], strides = [1, 1, 1]} : vector<2x16x32xf32> to vector<2x1x32xf32>
    %71 = vector.shape_cast %70 : vector<2x1x32xf32> to vector<2x32xf32>
    %72 = arith.maximumf %69, %71 : vector<2x32xf32>
    %73 = vector.extract_strided_slice %42 {offsets = [0, 12, 0], sizes = [2, 1, 32], strides = [1, 1, 1]} : vector<2x16x32xf32> to vector<2x1x32xf32>
    %74 = vector.shape_cast %73 : vector<2x1x32xf32> to vector<2x32xf32>
    %75 = vector.extract_strided_slice %42 {offsets = [0, 13, 0], sizes = [2, 1, 32], strides = [1, 1, 1]} : vector<2x16x32xf32> to vector<2x1x32xf32>
    %76 = vector.shape_cast %75 : vector<2x1x32xf32> to vector<2x32xf32>
    %77 = arith.maximumf %74, %76 : vector<2x32xf32>
    %78 = vector.extract_strided_slice %42 {offsets = [0, 14, 0], sizes = [2, 1, 32], strides = [1, 1, 1]} : vector<2x16x32xf32> to vector<2x1x32xf32>
    %79 = vector.shape_cast %78 : vector<2x1x32xf32> to vector<2x32xf32>
    %80 = vector.extract_strided_slice %42 {offsets = [0, 15, 0], sizes = [2, 1, 32], strides = [1, 1, 1]} : vector<2x16x32xf32> to vector<2x1x32xf32>
    %81 = vector.shape_cast %80 : vector<2x1x32xf32> to vector<2x32xf32>
    %82 = arith.maximumf %79, %81 : vector<2x32xf32>
    %83 = tpu.concatenate %47, %52, %57, %62, %67, %72, %77, %82 in 1 : vector<2x32xf32>, vector<2x32xf32>, vector<2x32xf32>, vector<2x32xf32>, vector<2x32xf32>, vector<2x32xf32>, vector<2x32xf32>, vector<2x32xf32> -> vector<2x256xf32>
    %84 = arith.truncf %83 : vector<2x256xf32> to vector<2x256xbf16>
    %c0_25 = arith.constant 0 : index
    %c0_26 = arith.constant 0 : index
    %85 = vector.load %arg10[%c0_25, %c0_26] : memref<256x32xbf16, #tpu.memory_space<vmem>>, vector<256x32xbf16>
    %cst_27 = arith.constant dense<0.000000e+00> : vector<2x32xf32>
    %86 = tpu.matmul %84, %85, %cst_27 {dimension_numbers = #tpu.dot_dimension_numbers<[1], [0], [0], [1], [0, 0, 1, 1], [], []>} : vector<2x256xbf16>, vector<256x32xbf16>, vector<2x32xf32> -> vector<2x32xf32>
    %c0_28 = arith.constant 0 : index
    %c0_29 = arith.constant 0 : index
    %87 = vector.load %arg11[%c0_28, %c0_29] : memref<1x32xf32, #tpu.memory_space<vmem>>, vector<1x32xf32>
    %88 = vector.broadcast %87 : vector<1x32xf32> to vector<2x32xf32>
    %89 = arith.addf %86, %88 : vector<2x32xf32>
    %cst_30 = arith.constant 0.000000e+00 : f32
    %90 = vector.broadcast %cst_30 : f32 to vector<2x32xf32>
    %91 = arith.maximumf %89, %90 : vector<2x32xf32>
    %92 = arith.truncf %91 : vector<2x32xf32> to vector<2x32xbf16>
    %c0_31 = arith.constant 0 : index
    %c0_32 = arith.constant 0 : index
    %93 = vector.load %arg12[%c0_31, %c0_32] : memref<32x128xbf16, #tpu.memory_space<vmem>>, vector<32x128xbf16>
    %cst_33 = arith.constant dense<0.000000e+00> : vector<2x128xf32>
    %94 = tpu.matmul %92, %93, %cst_33 {dimension_numbers = #tpu.dot_dimension_numbers<[1], [0], [0], [1], [0, 0, 1, 1], [], []>} : vector<2x32xbf16>, vector<32x128xbf16>, vector<2x128xf32> -> vector<2x128xf32>
    %c0_34 = arith.constant 0 : index
    %c0_35 = arith.constant 0 : index
    %95 = vector.load %arg13[%c0_34, %c0_35] : memref<1x128xf32, #tpu.memory_space<vmem>>, vector<1x128xf32>
    %96 = vector.broadcast %95 : vector<1x128xf32> to vector<2x128xf32>
    %97 = arith.addf %94, %96 : vector<2x128xf32>
    %c0_36 = arith.constant 0 : index
    %c0_37 = arith.constant 0 : index
    %98 = vector.load %arg14[%c0_36, %c0_37] : memref<2x128xf32, #tpu.memory_space<vmem>>, vector<2x128xf32>
    tpu.vector_store %arg14[%c0_36, %c0_37], %97 {strides = array<i32>} : memref<2x128xf32, #tpu.memory_space<vmem>>, vector<2x128xf32>,
    return
  }
  func.func @transform_0(%arg0: i32) -> (i32, i32, i32) {
    %c0_i32 = arith.constant 0 : i32
    %c0_i32_0 = arith.constant 0 : i32
    %c0_i32_1 = arith.constant 0 : i32
    return %arg0, %c0_i32, %c0_i32_0 : i32, i32, i32
  }
  func.func @transform_1(%arg0: i32) -> (i32, i32) {
    %c0_i32 = arith.constant 0 : i32
    %c0_i32_0 = arith.constant 0 : i32
    %c0_i32_1 = arith.constant 0 : i32
    return %c0_i32, %c0_i32_0 : i32, i32
  }
  func.func @transform_2(%arg0: i32) -> (i32, i32) {
    %c0_i32 = arith.constant 0 : i32
    %c0_i32_0 = arith.constant 0 : i32
    %c0_i32_1 = arith.constant 0 : i32
    return %c0_i32, %c0_i32_0 : i32, i32
  }
  func.func @transform_3(%arg0: i32) -> (i32, i32) {
    %c0_i32 = arith.constant 0 : i32
    %c0_i32_0 = arith.constant 0 : i32
    %c0_i32_1 = arith.constant 0 : i32
    return %c0_i32, %c0_i32_0 : i32, i32
  }
  func.func @transform_4(%arg0: i32) -> (i32, i32) {
    %c0_i32 = arith.constant 0 : i32
    %c0_i32_0 = arith.constant 0 : i32
    %c0_i32_1 = arith.constant 0 : i32
    return %c0_i32, %c0_i32_0 : i32, i32
  }
  func.func @transform_5(%arg0: i32) -> (i32, i32) {
    %c0_i32 = arith.constant 0 : i32
    %c0_i32_0 = arith.constant 0 : i32
    %c0_i32_1 = arith.constant 0 : i32
    return %c0_i32, %c0_i32_0 : i32, i32
  }
  func.func @transform_6(%arg0: i32) -> (i32, i32) {
    %c0_i32 = arith.constant 0 : i32
    %c0_i32_0 = arith.constant 0 : i32
    %c0_i32_1 = arith.constant 0 : i32
    return %c0_i32, %c0_i32_0 : i32, i32
  }
  func.func @transform_7(%arg0: i32) -> (i32, i32) {
    %c0_i32 = arith.constant 0 : i32
    %c0_i32_0 = arith.constant 0 : i32
    %c0_i32_1 = arith.constant 0 : i32
    return %c0_i32, %c0_i32_0 : i32, i32
  }
  func.func @transform_8(%arg0: i32) -> (i32, i32) {
    %c0_i32 = arith.constant 0 : i32
    %c0_i32_0 = arith.constant 0 : i32
    %c0_i32_1 = arith.constant 0 : i32
    return %c0_i32, %c0_i32_0 : i32, i32
  }
  func.func @transform_9(%arg0: i32) -> (i32, i32) {
    %c0_i32 = arith.constant 0 : i32
    %c0_i32_0 = arith.constant 0 : i32
    %c0_i32_1 = arith.constant 0 : i32
    return %c0_i32, %c0_i32_0 : i32, i32
  }
  func.func @transform_10(%arg0: i32) -> (i32, i32) {
    %c0_i32 = arith.constant 0 : i32
    %c0_i32_0 = arith.constant 0 : i32
    %c0_i32_1 = arith.constant 0 : i32
    return %c0_i32, %c0_i32_0 : i32, i32
  }
  func.func @transform_11(%arg0: i32) -> (i32, i32) {
    %c0_i32 = arith.constant 0 : i32
    %c0_i32_0 = arith.constant 0 : i32
    %c0_i32_1 = arith.constant 0 : i32
    return %c0_i32, %c0_i32_0 : i32, i32
  }
  func.func @transform_12(%arg0: i32) -> (i32, i32) {
    %c0_i32 = arith.constant 0 : i32
    %c0_i32_0 = arith.constant 0 : i32
    %c0_i32_1 = arith.constant 0 : i32
    return %c0_i32, %c0_i32_0 : i32, i32
  }
  func.func @transform_13(%arg0: i32) -> (i32, i32) {
    %c0_i32 = arith.constant 0 : i32
    %c0_i32_0 = arith.constant 0 : i32
    return %arg0, %c0_i32 : i32, i32
  }
}

</mosaic_0001>

<bundles_post_ra>
// kernel: tpu_custom_call.1
= control target key start
LH: loop header
LB: loop body
LE: loop exit
PB: predicated region body
PF: predicated region fallthrough
CT: control target
= control target key end

     0   :  { %vm81_vm0 = vcmask 1045504   ;;  %vm74_vm1 = vcmask 97280   ;;  %v1127_v7 = vmov 0   ;;  %s1475_s0 = inlined_call_operand.vmem [shape: f32[2,16,12], index: 0, kind: input, shape index: {}]   ;;  %s1476_s1 = inlined_call_operand.vmem [shape: f32[32,1], index: 1, kind: input, shape index: {}]   ;;  %s1477_s2 = inlined_call_operand.vmem [shape: f32[32,1], index: 2, kind: input, shape index: {}]   ;;  %s1478_s3 = inlined_call_operand.vmem [shape: bf16[12,32], index: 3, kind: input, shape index: {}]   ;;  %s1479_s4 = inlined_call_operand.vmem [shape: f32[1,32], index: 4, kind: input, shape index: {}]   ;;  %s1480_s5 = inlined_call_operand.vmem [shape: bf16[96,32], index: 5, kind: input, shape index: {}]   ;;  %s1481_s6 = inlined_call_operand.vmem [shape: f32[1,32], index: 6, kind: input, shape index: {}]   ;;  %s1482_s7 = inlined_call_operand.vmem [shape: bf16[96,32], index: 7, kind: input, shape index: {}]   ;;  %s1483_s8 = inlined_call_operand.vmem [shape: f32[1,32], index: 8, kind: input, shape index: {}]   ;;  %s1484_s9 = inlined_call_operand.vmem [shape: bf16[256,32], index: 9, kind: input, shape index: {}]   ;;  %s1485_s10 = inlined_call_operand.vmem [shape: f32[1,32], index: 10, kind: input, shape index: {}]   ;;  %s1486_s11 = inlined_call_operand.vmem [shape: bf16[32,128], index: 11, kind: input, shape index: {}]   ;;  %s1487_s12 = inlined_call_operand.vmem [shape: f32[1,128], index: 12, kind: input, shape index: {}]   ;;  %s1488_s13 = inlined_call_operand.hbm [shape: f32[2,128], index: 13, kind: output, shape index: {}]  }
   0x1   :  { %v1072_v0 = vld [vmem:[%s1478_s3] sm:$0x3f]   ;;  %v55_v2 = vld [vmem:[%s1475_s0 + $0x8] sm:$0xff]  ;;  %v56_v3 = vld [vmem:[%s1475_s0 + $0x10] sm:$0xff]  ;;  %1015 = vset.pattern.permute.xlu0 %v1127_v7  ;;  %1016 = vset.pattern.permute.xlu1 %v1127_v7 }
   0x2   :  { %v54_v1 = vld [vmem:[%s1475_s0] sm:$0xff]  ;;  %1007 = vmatprep.subr.msk.bf16.mxu0 %vm81_vm0, %v1072_v0  ;;  %v83_v4 = vsel %vm81_vm0, %v1072_v0, 0  ;;  %v57_v6 = vld [vmem:[%s1475_s0 + $0x18] sm:$0xff]  ;;  %v52_v9 = vld [vmem:[%s1477_s2 + $0x10] sm:$0xff] }
   0x3   :  { %v58_v5 = vpack.c.bf16 %v55_v2, %v54_v1  ;;  %v50_v8 = vld [vmem:[%s1477_s2] sm:$0xff]  ;;  %962 = vmatpush3.bf16.msra.mxu0 %v83_v4  ;;  %v59_v10 = vpack.c.bf16 %v57_v6, %v56_v3  ;;  %v51_v11 = vld [vmem:[%s1477_s2 + $0x8] sm:$0xff]  ;;  %v53_v12 = vld [vmem:[%s1477_s2 + $0x18] sm:$0xff]  ;;  %194 = vperm.xlu1 %1016, %v52_v9  }
   0x4   :  { %184 = vperm.xlu0 %1015, %v50_v8   ;;  %v46_v13 = vld [vmem:[%s1476_s1] sm:$0xff]  ;;  %v47_v14 = vld [vmem:[%s1476_s1 + $0x8] sm:$0xff]  ;;  %v48_v15 = vld [vmem:[%s1476_s1 + $0x10] sm:$0xff] }
   0x5   :  { %963 = vmatprep.mubr.msk.bf16.mxu0 %vm74_vm1, %v58_v5  ;;  %v49_v16 = vld [vmem:[%s1476_s1 + $0x18] sm:$0xff] }
   0x6   :  { %964 = vmatmul.mubr.msk.bf16.vlgmr.msra.gmra.mrb[0].mxu0 %vm74_vm1, %v59_v10 }
   0x7   :  { %199 = vperm.xlu1 %1016, %v53_v12  }
   0x8   :  { %189 = vperm.xlu0 %1015, %v51_v11  }
   0xb   :  { %156 = vperm.xlu1 %1016, %v47_v14  }
   0xc   :  { %151 = vperm.xlu0 %1015, %v46_v13  }
   0xf   :  { %166 = vperm.xlu1 %1016, %v49_v16  }
  0x10   :  { %161 = vperm.xlu0 %1015, %v48_v15  }
  0x11   :  { %18 = vsyncpa [#allocation3], 0  ;;  %v1073_v17 = vld [vmem:[%s1480_s5] sm:$0xff]   ;;  %v1074_v18 = vld [vmem:[%s1480_s5 + $0x8] sm:$0xff]   ;;  %v142_v21 = vlaneseq  ;;  %s1129_s24 = smov 64   ;;  %vm238_vm4 = vcmask 261120  }
  0x12   :  { %967 = vmatprep.subr.bf16.mxu1 %v1073_v17  ;;  %v1075_v19 = vld [vmem:[%s1480_s5 + $0x10] sm:$0xff]   ;;  %v1076_v20 = vld [vmem:[%s1480_s5 + $0x18] sm:$0xff]   ;;  %v874_v22 = vld [vmem:[%s1479_s4] ss:$0 sm:$0xff]  ;;  %vm243_vm5 = vcmask 523264   ;;  %vm305_vm6 = vcmask 785408  }
  0x13   :  { %968 = vmatpush3.bf16.msra.mxu1 %v1073_v17  ;;  %v1077_v23 = vld [vmem:[%s1480_s5 + $0x20] sm:$0xff]   ;;  %v1263_v27 = vshrl.u32 %v142_v21, 7  ;;  %v1078_v36 = vld [vmem:[%s1480_s5 + $0x28] sm:$0xff]   ;;  %s1128_s5 = smov 32   ;;  %vm564_vm7 = vcmask 1041409   ;;  %vm1132_vm8 = vmmov 0  }
  0x14   :  { %969 = vmatprep.subr.bf16.mxu1 %v1074_v18 }
  0x15   :  { %vm144_vm2 = vcmp.lt.s32.totalorder %v1263_v27, 1  ;;  %vm177_vm3 = vcmp.lt.s32.totalorder %v1263_v27, 7 }
  0x17   :  { %970 = vmatpush3.bf16.msra.mxu1 %v1074_v18 }
  0x18   :  { %971 = vmatprep.subr.bf16.mxu1 %v1075_v19 }
  0x1b   :  { %972 = vmatpush3.bf16.msra.mxu1 %v1075_v19 }
  0x1c   :  { %973 = vmatprep.subr.bf16.mxu1 %v1076_v20 }
  0x1f   :  { %974 = vmatpush3.bf16.msra.mxu1 %v1076_v20 }
  0x20   :  { %975 = vmatprep.subr.bf16.mxu1 %v1077_v23 }
  0x23   :  { %976 = vmatpush3.bf16.msra.mxu1 %v1077_v23 }
  0x24   :  { %977 = vmatprep.subr.bf16.mxu1 %v1078_v36 }
  0x27   :  { %978 = vmatpush3.bf16.msra.mxu1 %v1078_v36  ;;  %v1081_v36 = vld [vmem:[%s1482_s7 + $0x10] sm:$0xff]  }
  0x82   :  { %v1265_v33 = vpop.permute.xlu1 %194 }
  0x83   :  { %v1272_v38 = vpop.permute.xlu0 %184 }
  0x86   :  { %v1283_v54 = vpop.permute.xlu1 %199 }
  0x87   :  { %v1292_v59 = vpop.permute.xlu0 %189 }
  0x8a   :  { %v1302_v2 = vpop.permute.xlu1 %156 }
  0x8b   :  { %v1304_v3 = vpop.permute.xlu0 %151 }
  0x8e   :  { %v1306_v4 = vpop.permute.xlu1 %166 }
  0x8f   :  { %v1308_v5 = vpop.permute.xlu0 %161 }
  0xd9   :  { %v965_v24 = vpop.f32.mrb[0].mxu0 }
  0xda   :  { %v128_v25 = vadd.f32 %v965_v24, %v874_v22  ;;  %v119_v26 = vpop.f32.mrb[1].mxu0 }
  0xdb   :  { %v120_v28 = vadd.f32 %v874_v22, %v119_v26  ;;  %v966_v29 = vpop.f32.mrb[2].mxu0 }
  0xdc   :  { %v136_v30 = vmax.f32 %v128_v25, 0.0  ;;  %v131_v31 = vadd.f32 %v966_v29, %v874_v22  ;;  %v122_v32 = vpop.f32.mrb[3].mxu0 }
  0xdd   :  { %v134_v34 = vmax.f32 %v120_v28, 0.0  ;;  %v123_v35 = vadd.f32 %v874_v22, %v122_v32 }
  0xde   :  { %v137_v37 = vmax.f32 %v131_v31, 0.0  ;;  %v140_v39 = vrot.slane %v136_v30, 7  ;;  %v175_v43 = vrot.slane %v136_v30, 1 }
  0xdf   :  { %v138_v40 = vrot.slane %v134_v34, 7  ;;  %v173_v41 = vrot.slane %v134_v34, 1  ;;  %v135_v42 = vmax.f32 %v123_v35, 0.0  ;;  %v1080_v35 = vld [vmem:[%s1482_s7 + $0x8] sm:$0xff]  }
  0xe0   :  { %v141_v44 = vrot.slane %v137_v37, 7  ;;  %v176_v45 = vrot.slane %v137_v37, 1  ;;  %v1017_v46 = vpack.i.bf16 %v137_v37, %v136_v30  ;;  %v1082_v37 = vld [vmem:[%s1482_s7 + $0x18] sm:$0xff]  }
  0xe1   :  { %v139_v47 = vrot.slane %v135_v42, 7  ;;  %v174_v48 = vrot.slane %v135_v42, 1  ;;  %v1022_v49 = vpack.i.bf16 %v135_v42, %v134_v34  ;;  %v1079_v34 = vld [vmem:[%s1482_s7] sm:$0xff]  }
  0xe2   :  { %v148_v50 = vsel %vm144_vm2, %v141_v44, %v138_v40  ;;  %v145_v51 = vsel %vm144_vm2, %v140_v39, %v141_v44  ;;  %1018 = vrot.lane.b32.xlu1 %v1017_v46, %s1128_s5  ;;  %v178_v52 = vsel %vm177_vm3, %v175_v43, %v176_v45  ;;  %v181_v53 = vsel %vm177_vm3, %v176_v45, %v173_v41 }
  0xe3   :  { %v147_v55 = vsel %vm144_vm2, %v138_v40, %v139_v47  ;;  %v146_v56 = vsel %vm144_vm2, %v139_v47, %v140_v39  ;;  %1023 = vrot.lane.b32.xlu0 %v1022_v49, %s1128_s5  ;;  %v204_v57 = vmul.f32 %v1265_v33, %v178_v52  ;;  %v205_v58 = vmul.f32 %v1283_v54, %v181_v53  ;;  %v878_v39 = vld [vmem:[%s1481_s6] ss:$0 sm:$0xff] }
  0xe4   :  { %v179_v60 = vsel %vm177_vm3, %v174_v48, %v175_v43  ;;  %v180_v61 = vsel %vm177_vm3, %v173_v41, %v174_v48  ;;  %v171_v10 = vmul.f32 %v1308_v5, %v146_v56  ;;  %v172_v11 = vmul.f32 %v1306_v4, %v145_v51  ;;  %983 = vmatprep.subr.bf16.mxu0 %v1079_v34  ;;  %v1083_v40 = vld [vmem:[%s1482_s7 + $0x20] sm:$0xff]   ;;  %v1084_v51 = vld [vmem:[%s1482_s7 + $0x28] sm:$0xff]  }
  0xe5   :  { %v1032_v62 = vpack.i.bf16 %v205_v58, %v204_v57  ;;  %v202_v63 = vmul.f32 %v1272_v38, %v180_v61  ;;  %v203_v0 = vmul.f32 %v1292_v59, %v179_v60  ;;  %v169_v17 = vmul.f32 %v1304_v3, %v148_v50  ;;  %984 = vmatpush3.bf16.msra.mxu0 %v1079_v34 }
  0xe6   :  { %v170_v18 = vmul.f32 %v1302_v2, %v147_v55  ;;  %985 = vmatprep.subr.bf16.mxu0 %v1080_v35 }
  0xe7   :  { %1033 = vrot.lane.b32.xlu1 %v1032_v62, %s1129_s24  ;;  %v1027_v1 = vpack.i.bf16 %v203_v0, %v202_v63 }
  0xe9   :  { %1028 = vrot.lane.b32.xlu0 %v1027_v1, %s1129_s24  ;;  %986 = vmatpush3.bf16.msra.mxu0 %v1080_v35 }
  0xea   :  { %987 = vmatprep.subr.bf16.mxu0 %v1081_v36 }
  0xed   :  { %988 = vmatpush3.bf16.msra.mxu0 %v1081_v36 }
  0xee   :  { %989 = vmatprep.subr.bf16.mxu0 %v1082_v37 }
  0xf1   :  { %990 = vmatpush3.bf16.msra.mxu0 %v1082_v37 }
  0xf2   :  { %991 = vmatprep.subr.bf16.mxu0 %v1083_v40 }
  0xf5   :  { %992 = vmatpush3.bf16.msra.mxu0 %v1083_v40 }
  0xf6   :  { %993 = vmatprep.subr.bf16.mxu0 %v1084_v51 }
  0xf9   :  { %994 = vmatpush3.bf16.msra.mxu0 %v1084_v51  ;;  %v1096_v51 = vld [vmem:[%s1484_s9 + $0x28] sm:$0xff]  }
 0x154   :  { %v1019_v6 = vpop.permute.xlu1 %1018 }
 0x155   :  { %v1024_v7 = vpop.permute.xlu0 %1023  ;;  %v1021_v8 = vunpack.i.h.bf16 %v1019_v6  ;;  %v1020_v9 = vunpack.i.l.bf16 %v1019_v6 }
 0x156   :  { %v1026_v12 = vunpack.i.h.bf16 %v1024_v7  ;;  %v1025_v13 = vunpack.i.l.bf16 %v1024_v7 }
 0x157   :  { %v242_v19 = vsel %vm238_vm4, %v172_v11, %v1021_v8  ;;  %v241_v20 = vsel %vm238_vm4, %v171_v10, %v1020_v9 }
 0x158   :  { %v239_v28 = vsel %vm238_vm4, %v169_v17, %v1025_v13  ;;  %v240_v29 = vsel %vm238_vm4, %v170_v18, %v1026_v12 }
 0x159   :  { %v1034_v14 = vpop.permute.xlu1 %1033 }
 0x15a   :  { %v1036_v15 = vunpack.i.h.bf16 %v1034_v14  ;;  %v1035_v16 = vunpack.i.l.bf16 %v1034_v14 }
 0x15b   :  { %v1029_v21 = vpop.permute.xlu0 %1028 }
 0x15c   :  { %v246_v22 = vsel %vm243_vm5, %v241_v20, %v1035_v16  ;;  %v247_v23 = vsel %vm243_vm5, %v242_v19, %v1036_v15  ;;  %v1031_v24 = vunpack.i.h.bf16 %v1029_v21  ;;  %v1030_v25 = vunpack.i.l.bf16 %v1029_v21 }
 0x15d   :  { %v249_v26 = vpack.c.bf16 %v247_v23, %v246_v22 }
 0x15e   :  { %v244_v30 = vsel %vm243_vm5, %v239_v28, %v1030_v25  ;;  %v245_v31 = vsel %vm243_vm5, %v240_v29, %v1031_v24 }
 0x15f   :  { %v248_v32 = vpack.c.bf16 %v245_v31, %v244_v30 }
 0x161   :  { %979 = vmatprep.mubr.msk.bf16.mxu1 %vm305_vm6, %v248_v32 }
 0x162   :  { %980 = vmatmul.mubr.msk.bf16.vlgmr.msra.gmra.mrb[0].mxu1 %vm305_vm6, %v249_v26 }
 0x235   :  { %v981_v41 = vpop.f32.mrb[0].mxu1 }
 0x236   :  { %v355_v42 = vadd.f32 %v981_v41, %v878_v39  ;;  %v346_v43 = vpop.f32.mrb[1].mxu1 }
 0x237   :  { %v347_v44 = vadd.f32 %v878_v39, %v346_v43  ;;  %v982_v45 = vpop.f32.mrb[2].mxu1  ;;  %v1088_v43 = vld [vmem:[%s1484_s9 + $0x8] sm:$0xff]  }
 0x238   :  { %v363_v46 = vmax.f32 %v355_v42, 0.0  ;;  %v358_v47 = vadd.f32 %v982_v45, %v878_v39  ;;  %v349_v48 = vpop.f32.mrb[3].mxu1  ;;  %v1087_v42 = vld [vmem:[%s1484_s9 + $0x48] sm:$0xff]   ;;  %v1090_v45 = vld [vmem:[%s1484_s9 + $0x10] sm:$0xff]  }
 0x239   :  { %v361_v49 = vmax.f32 %v347_v44, 0.0  ;;  %v350_v50 = vadd.f32 %v878_v39, %v349_v48  ;;  %v1089_v44 = vld [vmem:[%s1484_s9 + $0x50] sm:$0xff]   ;;  %v1093_v48 = vld [vmem:[%s1484_s9 + $0x60] sm:$0xff]  }
 0x23a   :  { %v364_v52 = vmax.f32 %v358_v47, 0.0  ;;  %v367_v53 = vrot.slane %v363_v46, 7  ;;  %v379_v58 = vrot.slane %v363_v46, 1  ;;  %v1092_v47 = vld [vmem:[%s1484_s9 + $0x18] sm:$0xff]  }
 0x23b   :  { %v365_v55 = vrot.slane %v361_v49, 7  ;;  %v377_v56 = vrot.slane %v361_v49, 1  ;;  %v362_v57 = vmax.f32 %v350_v50, 0.0  ;;  %v1095_v50 = vld [vmem:[%s1484_s9 + $0x68] sm:$0xff]  }
 0x23c   :  { %v368_v60 = vrot.slane %v364_v52, 7  ;;  %v380_v61 = vrot.slane %v364_v52, 1  ;;  %v1037_v62 = vpack.i.bf16 %v364_v52, %v363_v46  ;;  %v1091_v46 = vld [vmem:[%s1484_s9 + $0x58] sm:$0xff]   ;;  %v887_v52 = vld [vmem:[%s1483_s8] ss:$0 sm:$0xff] }
 0x23d   :  { %v366_v63 = vrot.slane %v362_v57, 7  ;;  %v378_v0 = vrot.slane %v362_v57, 1  ;;  %v1042_v1 = vpack.i.bf16 %v362_v57, %v361_v49  ;;  %v1094_v49 = vld [vmem:[%s1484_s9 + $0x20] sm:$0xff]  }
 0x23e   :  { %v369_v6 = vsel %vm144_vm2, %v367_v53, %v368_v60  ;;  %v372_v7 = vsel %vm144_vm2, %v368_v60, %v365_v55  ;;  %1038 = vrot.lane.b32.xlu1 %v1037_v62, %s1128_s5  ;;  %v381_v8 = vsel %vm177_vm3, %v379_v58, %v380_v61  ;;  %v384_v9 = vsel %vm177_vm3, %v380_v61, %v377_v56 }
 0x23f   :  { %v370_v10 = vsel %vm144_vm2, %v366_v63, %v367_v53  ;;  %v371_v11 = vsel %vm144_vm2, %v365_v55, %v366_v63  ;;  %1043 = vrot.lane.b32.xlu0 %v1042_v1, %s1128_s5  ;;  %v387_v12 = vmul.f32 %v381_v8, %v1265_v33  ;;  %v388_v13 = vmul.f32 %v384_v9, %v1283_v54  ;;  %v1097_v9 = vld [vmem:[%s1484_s9 + $0x70] sm:$0xff]  }
 0x240   :  { %v382_v14 = vsel %vm177_vm3, %v378_v0, %v379_v58  ;;  %v383_v15 = vsel %vm177_vm3, %v377_v56, %v378_v0  ;;  %v375_v22 = vmul.f32 %v370_v10, %v1308_v5  ;;  %v376_v23 = vmul.f32 %v369_v6, %v1306_v4  ;;  %v1098_v10 = vld [vmem:[%s1484_s9 + $0x30] sm:$0xff]  }
 0x241   :  { %v1052_v16 = vpack.i.bf16 %v388_v13, %v387_v12  ;;  %v385_v17 = vmul.f32 %v383_v15, %v1272_v38  ;;  %v386_v18 = vmul.f32 %v382_v14, %v1292_v59  ;;  %v373_v29 = vmul.f32 %v372_v7, %v1304_v3  ;;  %v1086_v3 = vld [vmem:[%s1484_s9] sm:$0xff]  }
 0x242   :  { %v374_v30 = vmul.f32 %v371_v11, %v1302_v2  ;;  %v1085_v2 = vld [vmem:[%s1484_s9 + $0x40] sm:$0xff]  }
 0x243   :  { %1053 = vrot.lane.b32.xlu1 %v1052_v16, %s1129_s24  ;;  %v1047_v19 = vpack.i.bf16 %v386_v18, %v385_v17  ;;  %936 = vmatprep.subr.bf16.mxu1 %v1085_v2 }
 0x244   :  { %937 = vmatpush3.bf16.msra.mxu1 %v1086_v3 }
 0x245   :  { %1048 = vrot.lane.b32.xlu0 %v1047_v19, %s1129_s24  ;;  %938 = vmatprep.subr.bf16.mxu1 %v1087_v42 }
 0x248   :  { %939 = vmatpush3.bf16.msra.mxu1 %v1088_v43 }
 0x249   :  { %940 = vmatprep.subr.bf16.mxu1 %v1089_v44 }
 0x24c   :  { %941 = vmatpush3.bf16.msra.mxu1 %v1090_v45 }
 0x24d   :  { %942 = vmatprep.subr.bf16.mxu1 %v1091_v46 }
 0x250   :  { %943 = vmatpush3.bf16.msra.mxu1 %v1092_v47 }
 0x251   :  { %944 = vmatprep.subr.bf16.mxu1 %v1093_v48 }
 0x254   :  { %945 = vmatpush3.bf16.msra.mxu1 %v1094_v49 }
 0x255   :  { %946 = vmatprep.subr.bf16.mxu1 %v1095_v50 }
 0x258   :  { %947 = vmatpush3.bf16.msra.mxu1 %v1096_v51 }
 0x259   :  { %948 = vmatprep.subr.bf16.mxu1 %v1097_v9  ;;  %v913_v9 = vld [vmem:[%s1487_s12] ss:$0 sm:$0xff] }
 0x25c   :  { %949 = vmatpush3.bf16.msra.mxu1 %v1098_v10 }
 0x2b0   :  { %v1039_v20 = vpop.permute.xlu1 %1038 }
 0x2b1   :  { %v1044_v33 = vpop.permute.xlu0 %1043  ;;  %v1041_v21 = vunpack.i.h.bf16 %v1039_v20  ;;  %v1040_v54 = vunpack.i.l.bf16 %v1039_v20 }
 0x2b2   :  { %v1046_v27 = vunpack.i.h.bf16 %v1044_v33  ;;  %v1045_v24 = vunpack.i.l.bf16 %v1044_v33 }
 0x2b3   :  { %v423_v59 = vsel %vm238_vm4, %v375_v22, %v1040_v54  ;;  %v424_v28 = vsel %vm238_vm4, %v376_v23, %v1041_v21 }
 0x2b4   :  { %v421_v35 = vsel %vm238_vm4, %v373_v29, %v1045_v24  ;;  %v422_v36 = vsel %vm238_vm4, %v374_v30, %v1046_v27  ;;  %v1099_v24 = vld [vmem:[%s1484_s9 + $0x78] sm:$0xff]  }
 0x2b5   :  { %v1054_v25 = vpop.permute.xlu1 %1053  ;;  %950 = vmatprep.subr.bf16.mxu1 %v1099_v24 }
 0x2b6   :  { %v1056_v26 = vunpack.i.h.bf16 %v1054_v25  ;;  %v1055_v38 = vunpack.i.l.bf16 %v1054_v25  ;;  %v1100_v25 = vld [vmem:[%s1484_s9 + $0x38] sm:$0xff]   ;;  %s1130_s9 = smov 96  }
 0x2b7   :  { %v1049_v31 = vpop.permute.xlu0 %1048  ;;  %951 = vmatpush3.bf16.msra.mxu1 %v1100_v25 }
 0x2b8   :  { %v428_v32 = vsel %vm243_vm5, %v424_v28, %v1056_v26  ;;  %v427_v5 = vsel %vm243_vm5, %v423_v59, %v1055_v38  ;;  %v1051_v34 = vunpack.i.h.bf16 %v1049_v31  ;;  %v1050_v4 = vunpack.i.l.bf16 %v1049_v31 }
 0x2b9   :  { %v430_v37 = vpack.c.bf16 %v428_v32, %v427_v5 }
 0x2ba   :  { %v425_v39 = vsel %vm243_vm5, %v421_v35, %v1050_v4  ;;  %v426_v40 = vsel %vm243_vm5, %v422_v36, %v1051_v34 }
 0x2bb   :  { %v429_v41 = vpack.c.bf16 %v426_v40, %v425_v39 }
 0x2bd   :  { %995 = vmatprep.mubr.msk.bf16.mxu0 %vm305_vm6, %v429_v41 }
 0x2be   :  { %996 = vmatmul.mubr.msk.bf16.vlgmr.msra.gmra.mrb[4].mxu0 %vm305_vm6, %v430_v37 }
 0x391   :  { %v997_v53 = vpop.f32.mrb[4].mxu0 }
 0x392   :  { %v535_v55 = vadd.f32 %v997_v53, %v887_v52  ;;  %v526_v56 = vpop.f32.mrb[5].mxu0 }
 0x393   :  { %v527_v57 = vadd.f32 %v887_v52, %v526_v56  ;;  %v998_v58 = vpop.f32.mrb[6].mxu0  ;;  %v1101_v56 = vld [vmem:[%s1486_s11] sm:$0xff]  }
 0x394   :  { %v543_v60 = vmax.f32 %v535_v55, 0.0  ;;  %v538_v61 = vadd.f32 %v998_v58, %v887_v52  ;;  %v529_v62 = vpop.f32.mrb[7].mxu0  ;;  %v1102_v58 = vld [vmem:[%s1486_s11 + $0x8] sm:$0xff]   ;;  %s1133_s11 = smov [#allocation2]  }
 0x395   :  { %v541_v63 = vmax.f32 %v527_v57, 0.0  ;;  %v530_v0 = vadd.f32 %v887_v52, %v529_v62  ;;  %v1131_v57 = vmov 0.0   ;;  %s866_s14 = sshll.u32 %s1133_s11, 4  ;;  %s867_s14 = int_to_ptr.vmem [resolvable:$true] %s866_s14 }
 0x396   :  { %v548_v1 = vrot.slane %v543_v60, 1  ;;  %v544_v6 = vmax.f32 %v538_v61, 0.0  ;;  %999 = vmatprep.subr.bf16.mxu0 %v1131_v57  ;;  %1003 = vmatprep.mubr.msk.bf16.mxu0 %vm1132_vm8, %v1131_v57  ;;  %v896_v61 = vld [vmem:[%s1485_s10] ss:$0 sm:$0xff]  ;;  %s1103_s10 = scalar_lea.vmem %s867_s14, 32  ;;  %p1108_p1 = scmp.lt.s32.totalorder %s867_s14, %s867_s14 }
 0x397   :  { %v547_v7 = vrot.slane %v541_v63, 1  ;;  %v542_v8 = vmax.f32 %v530_v0, 0.0  ;;  %1000 = vmatpush3.bf16.msra.mxu0 %v1101_v56  ;;  %p1104_p0 = scmp.ne.s32.totalorder %s867_s14, %s1103_s10  ;;  %p1109_p2 = scmp.lt.s32.totalorder %s1103_s10, %s1103_s10 }
 0x398   :  { %v552_v11 = vmax.f32 %v543_v60, %v548_v1  ;;  %v556_v12 = vrot.slane %v544_v6, 1  ;;  %1001 = vmatprep.subr.bf16.mxu0 %v1131_v57 }
 0x399   :  { %v551_v13 = vmax.f32 %v541_v63, %v547_v7  ;;  %v555_v14 = vrot.slane %v542_v8, 1  ;;  %p1110_p3 = por %p1109_p2, %p1108_p1 }
 0x39a   :  { %v563_v15 = vrot.slane %v552_v11, 7  ;;  %v560_v16 = vmax.f32 %v544_v6, %v556_v12  ;;  %v574_v17 = vrot.slane %v552_v11, 3  ;;  %v568_v18 = vrot.slane %v552_v11, 1 }
 0x39b   :  { %v559_v19 = vmax.f32 %v542_v8, %v555_v14  ;;  %v573_v20 = vrot.slane %v551_v13, 4  ;;  %v567_v33 = vrot.slane %v551_v13, 2  ;;  %v579_v21 = vrot.slane %v551_v13, 6  ;;  %1002 = vmatpush3.bf16.msra.mxu0 %v1102_v58  ;;  %p1111_p4 = pnand %p1110_p3, %p1104_p0 }
 0x39c   :  { %v587_v54 = vrot.slane %v560_v16, 7  ;;  %v597_v22 = vrot.slane %v560_v16, 3  ;;  %v591_v23 = vrot.slane %v560_v16, 1  ;;  %v580_v27 = vrot.slane %v552_v11, 5 }
 0x39d   :  { %v575_v26 = vsel %vm564_vm7, %v574_v17, %v573_v20  ;;  %v596_v38 = vrot.slane %v559_v19, 4  ;;  %v569_v59 = vsel %vm564_vm7, %v568_v18, %v567_v33  ;;  %v590_v28 = vrot.slane %v559_v19, 2 }
 0x39e   :  { %v581_v29 = vsel %vm564_vm7, %v580_v27, %v579_v21  ;;  %v602_v30 = vrot.slane %v559_v19, 6  ;;  %v603_v31 = vrot.slane %v560_v16, 5  ;;  %v588_v32 = vsel %vm564_vm7, %v587_v54, %v559_v19 }
 0x39f   :  { %v598_v5 = vsel %vm564_vm7, %v597_v22, %v596_v38  ;;  %v592_v34 = vsel %vm564_vm7, %v591_v23, %v590_v28  ;;  %v565_v4 = vsel %vm564_vm7, %v563_v15, %v551_v13 }
 0x3a0   :  { %v1062_v35 = vpack.i.bf16 %v575_v26, %v598_v5  ;;  %v1057_v36 = vpack.i.bf16 %v569_v59, %v592_v34  ;;  %v604_v37 = vsel %vm564_vm7, %v603_v31, %v602_v30 }
 0x3a1   :  { %v1067_v39 = vpack.i.bf16 %v581_v29, %v604_v37 }
 0x3a2   :  { %1063 = vrot.lane.b32.xlu1 %v1062_v35, %s1129_s24  ;;  %1058 = vrot.lane.b32.xlu0 %v1057_v36, %s1128_s5 }
 0x3a6   :  { %1068 = vrot.lane.b32.xlu0 %v1067_v39, %s1130_s9 }
 0x414   :  { %v1064_v40 = vpop.permute.xlu1 %1063  ;;  %v1059_v41 = vpop.permute.xlu0 %1058 }
 0x415   :  { %v1061_v2 = vunpack.i.h.bf16 %v1059_v41  ;;  %v1060_v3 = vunpack.i.l.bf16 %v1059_v41  ;;  %v1066_v42 = vunpack.i.h.bf16 %v1064_v40  ;;  %v1065_v43 = vunpack.i.l.bf16 %v1064_v40 }
 0x417   :  { %v608_v44 = vsel %vm238_vm4, %v565_v4, %v1061_v2  ;;  %v611_v45 = vsel %vm238_vm4, %v588_v32, %v1060_v3 }
 0x418   :  { %v1069_v46 = vpop.permute.xlu0 %1068  ;;  %v609_v49 = vsel %vm243_vm5, %v608_v44, %v1066_v42  ;;  %v612_v50 = vsel %vm243_vm5, %v611_v45, %v1065_v43 }
 0x419   :  { %v1071_v47 = vunpack.i.h.bf16 %v1069_v46  ;;  %v1070_v48 = vunpack.i.l.bf16 %v1069_v46 }
 0x41b   :  { %v610_v51 = vsel %vm305_vm6, %v609_v49, %v1071_v47  ;;  %v613_v52 = vsel %vm305_vm6, %v612_v50, %v1070_v48 }
 0x41c   :  { %v614_v53 = vpack.c.bf16 %v610_v51, %v610_v51  ;;  %v615_v55 = vpack.c.bf16 %v613_v52, %v613_v52 }
 0x41e   :  { %783 = vmatprep.mubr.bf16.mxu1 %v615_v55 }
 0x41f   :  { %784 = vmatmul.mubr.bf16.vlgmr.msra.gmra.mrb[4].mxu1 %v614_v53 }
 0x4f2   :  { %v952_v60 = vpop.f32.mrb[4].mxu1 }
 0x4f3   :  { %v953_v62 = vpop.f32.mrb[5].mxu1 }
 0x4f4   :  { %v954_v63 = vadd.f32 %v953_v62, %v952_v60  ;;  %v955_v0 = vpop.f32.mrb[6].mxu1 }
 0x4f5   :  { %v956_v1 = vpop.f32.mrb[7].mxu1 }
 0x4f6   :  { %v786_v6 = vadd.f32 %v954_v63, %v896_v61 }
 0x4f8   :  { %v791_v7 = vmax.f32 %v786_v6, 0.0 }
 0x4fa   :  { %v792_v8 = vpack.c.bf16 %v791_v7, %v791_v7 }
 0x4fc   :  { %1004 = vmatmul.mubr.msk.bf16.vlgmr.msra.gmra.mrb[8].mxu0 %vm238_vm4, %v792_v8 }
 0x5cf   :  { %v853_v10 = vpop.f32.mrb[8].mxu0 }
 0x5d0   :  { %v854_v11 = vadd.f32 %v913_v9, %v853_v10  ;;  %v1005_v12 = vpop.f32.mrb[9].mxu0 }
 0x5d1   :  { %v856_v13 = vpop.f32.mrb[10].mxu0 }
 0x5d2   :  { %859 = vst [vmem:[#allocation2] sm:$0x3] %v854_v11  ;;  %v1006_v14 = vpop.f32.mrb[11].mxu0 }
 0x5d3   :  { %1114 = shalt.err (!%p1111_p4)
}
 0x5d4   :  { %s1115_s12 = scalar_lea.hbm %s1488_s13, 32 }
 0x5d5   :  { %p1116_p5 = scmp.ne.s32.totalorder %s1488_s13, %s1115_s12  ;;  %p1119_p6 = scmp.lt.u32.totalorder %s1115_s12, %s1488_s13 }
 0x5d7   :  { %p1121_p7 = pnand %p1119_p6, %p1116_p5 }
 0x5d9   :  { %1124 = shalt.err (!%p1121_p7)
}
 0x5da   :  { %869 = dma.vmem_to_hbm [thread:$0]  %s867_s14, 32, %s1488_s13, [#allocation3]  }
 0x5db   :  { %1125 = dma.done.wait [#allocation3], 32  }
 0x5dc   :  { %1126 = vsyncadd [#allocation3], 4294967264 }
 0x5dd   :  { %873 = vsyncpa [#allocation3], 1 }

</bundles_post_ra>
